<compile_context>
chip_gen: v7x
topology: tpu7x:2x2x1
jax: 0.10.0
libtpu: 0.0.40
codegen_flags: <defaults>
</compile_context>

<pallas_src>
import jax
import jax.numpy as jnp
import numpy as np
from jax import lax
from jax.experimental import pallas as pl
from jax.experimental.pallas import tpu as pltpu

# ----- model hyperparameters (small, consistent with the module's forward) -----
VOCAB_SIZE = 16       # len(char2id)
EMBED_DIM = 32        # embedding_dim (200 in the original; shrunk per instructions)
HIDDEN_DIM = 32       # hidden_dim    (128 in the original; shrunk per instructions)
PAD_IDX = 0           # char2id[' ']
BATCH = 2
SEQ_LEN = 8


def _gru_kernel(x_ref, wih_ref, whh_ref, bi_ref, bhn_ref, hs_ref):
  """Whole GRU recurrence in a single invocation.

  x_ref   : (T*B, E)  time-major flattened embedded inputs
  wih_ref : (E, 3H)   input->gates weights (transposed, gate order r,z,n)
  whh_ref : (H, 3H)   hidden->gates weights (transposed)
  bi_ref  : (1, 3H)   folded bias: [bir+bhr, biz+bhz, bin]
  bhn_ref : (1, H)    recurrent bias of the n gate (kept separate for r-gating)
  hs_ref  : (B, T*H)  lane-dense output slab, hs[:, t*H:(t+1)*H] = h_t
  """
  B = hs_ref.shape[0]
  H = whh_ref.shape[0]
  T = hs_ref.shape[1] // H

  # Hoisted input projection + folded biases for all T timesteps: one MXU call.
  gi_all = jnp.dot(x_ref[...], wih_ref[...],
                   preferred_element_type=jnp.float32) + bi_ref[...]

  # Hoist constant loads / broadcasts out of the recurrence.
  w_hh = whh_ref[...]
  bhn = jnp.broadcast_to(bhn_ref[...], (B, H))

  h = jnp.zeros((B, H), jnp.float32)
  for t in range(T):                      # fully unrolled; T is small and static
    gi = gi_all[t * B:(t + 1) * B, :]
    gh = jnp.dot(h, w_hh, preferred_element_type=jnp.float32)
    r = jax.nn.sigmoid(gi[:, 0 * H:1 * H] + gh[:, 0 * H:1 * H])
    z = jax.nn.sigmoid(gi[:, 1 * H:2 * H] + gh[:, 1 * H:2 * H])
    n = jnp.tanh(gi[:, 2 * H:3 * H] + r * (gh[:, 2 * H:3 * H] + bhn))
    h = (1.0 - z) * n + z * h
    hs_ref[:, t * H:(t + 1) * H] = h      # static slice into the resident slab


def encoder_forward(sequence, params):
  """sequence: int32 (B, T). Returns (hs (B, T, H), h (1, B, H))."""
  emb, wih_t, whh_t, bi, bhn = params
  B, T = sequence.shape
  V, E = emb.shape
  H = whh_t.shape[0]

  # Embedding lookup (gather) in the wrapper; time-major flatten for the kernel.
  x = emb[sequence]                                   # (B, T, E)
  x_flat = jnp.transpose(x, (1, 0, 2)).reshape(T * B, E)

  hs_slab = pl.pallas_call(
      _gru_kernel,
      out_shape=jax.ShapeDtypeStruct((B, T * H), jnp.float32),
      grid=(1,),
      in_specs=[
          pl.BlockSpec((T * B, E), lambda i: (0, 0)),
          pl.BlockSpec((E, 3 * H), lambda i: (0, 0)),
          pl.BlockSpec((H, 3 * H), lambda i: (0, 0)),
          pl.BlockSpec((1, 3 * H), lambda i: (0, 0)),
          pl.BlockSpec((1, H), lambda i: (0, 0)),
      ],
      out_specs=pl.BlockSpec((B, T * H), lambda i: (0, 0)),
      compiler_params=pltpu.CompilerParams(
          dimension_semantics=("arbitrary",)),
  )(x_flat, wih_t, whh_t, bi, bhn)

  hs = hs_slab.reshape(B, T, H)                       # batch_first, no transpose
  h = hs[:, -1, :][None]                              # (1, B, H) == nn.GRU final h
  return hs, h


def init_params(key):
  """Init mimicking PyTorch (N(0,1) embedding, U(-1/sqrt(H), 1/sqrt(H)) GRU)."""
  k_emb, k_wih, k_whh, k_bih, k_bhh = jax.random.split(key, 5)
  H = HIDDEN_DIM
  emb = jax.random.normal(k_emb, (VOCAB_SIZE, EMBED_DIM), jnp.float32)
  emb = emb.at[PAD_IDX].set(0.0)                      # padding_idx row is zero
  bound = 1.0 / np.sqrt(H)
  wih = jax.random.uniform(k_wih, (3 * H, EMBED_DIM), jnp.float32, -bound, bound)
  whh = jax.random.uniform(k_whh, (3 * H, H), jnp.float32, -bound, bound)
  bih = jax.random.uniform(k_bih, (3 * H,), jnp.float32, -bound, bound)
  bhh = jax.random.uniform(k_bhh, (3 * H,), jnp.float32, -bound, bound)

  # Kernel-friendly layout: transposed weights, folded biases.
  #   bi  = [bir+bhr, biz+bhz, bin]  (added once in the hoisted input projection)
  #   bhn = recurrent n-gate bias    (must stay inside the r-gated term)
  bi = jnp.concatenate([bih[:H] + bhh[:H],
                        bih[H:2 * H] + bhh[H:2 * H],
                        bih[2 * H:]]).reshape(1, 3 * H)
  bhn = bhh[2 * H:].reshape(1, H)
  return (emb, wih.T, whh.T, bi, bhn)


def encoder_reference(sequence, params):
  """Pure-JAX reference (lax.scan) matching torch.nn.GRU semantics."""
  emb, wih_t, whh_t, bi, bhn = params
  H = whh_t.shape[0]
  x = emb[sequence]                                   # (B, T, E)
  h0 = jnp.zeros((sequence.shape[0], H), jnp.float32)

  def step(h, x_t):
    gi = x_t @ wih_t + bi                             # folded r/z biases + bin
    gh = h @ whh_t
    r = jax.nn.sigmoid(gi[:, :H] + gh[:, :H])
    z = jax.nn.sigmoid(gi[:, H:2 * H] + gh[:, H:2 * H])
    n = jnp.tanh(gi[:, 2 * H:] + r * (gh[:, 2 * H:] + bhn))
    h_new = (1.0 - z) * n + z * h
    return h_new, h_new

  h_last, hs_tm = lax.scan(step, h0, jnp.transpose(x, (1, 0, 2)))
  return jnp.transpose(hs_tm, (1, 0, 2)), h_last[None]


if __name__ == "__main__":
  key = jax.random.PRNGKey(0)
  k_seq, k_params = jax.random.split(key)

  params = init_params(k_params)
  sequence = jax.random.randint(k_seq, (BATCH, SEQ_LEN), 0, VOCAB_SIZE, jnp.int32)

  hs, h = jax.jit(encoder_forward)(sequence, params)
  jax.block_until_ready((hs, h))

  hs_ref, h_ref = encoder_reference(sequence, params)
  np.testing.assert_allclose(np.asarray(hs), np.asarray(hs_ref), rtol=1e-5, atol=1e-5)
  np.testing.assert_allclose(np.asarray(h), np.asarray(h_ref), rtol=1e-5, atol=1e-5)

  assert hs.shape == (BATCH, SEQ_LEN, HIDDEN_DIM)
  assert h.shape == (1, BATCH, HIDDEN_DIM)
  print("KERNEL_OK")
</pallas_src>

<mosaic_0001>
module attributes {stable_mosaic.version = 11 : i64} {
  func.func @_gru_kernel(%arg0: i32, %arg1: memref<16x32xf32, #tpu.memory_space<vmem>>, %arg2: memref<32x96xf32, #tpu.memory_space<vmem>>, %arg3: memref<32x96xf32, #tpu.memory_space<vmem>>, %arg4: memref<1x96xf32, #tpu.memory_space<vmem>>, %arg5: memref<1x32xf32, #tpu.memory_space<vmem>>, %arg6: memref<2x256xf32, #tpu.memory_space<vmem>>) attributes {dimension_semantics = [#tpu.dimension_semantics<arbitrary>], iteration_bounds = array<i64: 1>, scalar_prefetch = 0 : i64, scratch_operands = 0 : i64, tpu.core_type = #tpu.core_type<tc>, window_params = [{pipeline_mode = #tpu.pipeline_mode<synchronous>, transform_indices = @transform_0, window_bounds = array<i64: 16, 32>}, {pipeline_mode = #tpu.pipeline_mode<synchronous>, transform_indices = @transform_1, window_bounds = array<i64: 32, 96>}, {pipeline_mode = #tpu.pipeline_mode<synchronous>, transform_indices = @transform_2, window_bounds = array<i64: 32, 96>}, {pipeline_mode = #tpu.pipeline_mode<synchronous>, transform_indices = @transform_3, window_bounds = array<i64: 1, 96>}, {pipeline_mode = #tpu.pipeline_mode<synchronous>, transform_indices = @transform_4, window_bounds = array<i64: 1, 32>}, {pipeline_mode = #tpu.pipeline_mode<synchronous>, transform_indices = @transform_5, window_bounds = array<i64: 2, 256>}]} {
    %c0 = arith.constant 0 : index
    %c0_0 = arith.constant 0 : index
    %0 = vector.load %arg1[%c0, %c0_0] : memref<16x32xf32, #tpu.memory_space<vmem>>, vector<16x32xf32>
    %c0_1 = arith.constant 0 : index
    %c0_2 = arith.constant 0 : index
    %1 = vector.load %arg2[%c0_1, %c0_2] : memref<32x96xf32, #tpu.memory_space<vmem>>, vector<32x96xf32>
    %cst = arith.constant dense<0.000000e+00> : vector<16x96xf32>
    %2 = tpu.matmul %0, %1, %cst {dimension_numbers = #tpu.dot_dimension_numbers<[1], [0], [0], [1], [0, 0, 1, 1], [], []>} : vector<16x32xf32>, vector<32x96xf32>, vector<16x96xf32> -> vector<16x96xf32>
    %c0_3 = arith.constant 0 : index
    %c0_4 = arith.constant 0 : index
    %3 = vector.load %arg4[%c0_3, %c0_4] : memref<1x96xf32, #tpu.memory_space<vmem>>, vector<1x96xf32>
    %4 = vector.broadcast %3 : vector<1x96xf32> to vector<16x96xf32>
    %5 = arith.addf %2, %4 : vector<16x96xf32>
    %c0_5 = arith.constant 0 : index
    %c0_6 = arith.constant 0 : index
    %6 = vector.load %arg3[%c0_5, %c0_6] : memref<32x96xf32, #tpu.memory_space<vmem>>, vector<32x96xf32>
    %c0_7 = arith.constant 0 : index
    %c0_8 = arith.constant 0 : index
    %7 = vector.load %arg5[%c0_7, %c0_8] : memref<1x32xf32, #tpu.memory_space<vmem>>, vector<1x32xf32>
    %8 = vector.shape_cast %7 : vector<1x32xf32> to vector<1x32xf32>
    %9 = vector.broadcast %8 : vector<1x32xf32> to vector<2x32xf32>
    %cst_9 = arith.constant 0.000000e+00 : f32
    %10 = vector.broadcast %cst_9 : f32 to vector<2x32xf32>
    %11 = vector.extract_strided_slice %5 {offsets = [0, 0], sizes = [2, 96], strides = [1, 1]} : vector<16x96xf32> to vector<2x96xf32>
    %cst_10 = arith.constant dense<0.000000e+00> : vector<2x96xf32>
    %12 = tpu.matmul %10, %6, %cst_10 {dimension_numbers = #tpu.dot_dimension_numbers<[1], [0], [0], [1], [0, 0, 1, 1], [], []>} : vector<2x32xf32>, vector<32x96xf32>, vector<2x96xf32> -> vector<2x96xf32>
    %13 = vector.extract_strided_slice %11 {offsets = [0, 0], sizes = [2, 32], strides = [1, 1]} : vector<2x96xf32> to vector<2x32xf32>
    %14 = vector.extract_strided_slice %12 {offsets = [0, 0], sizes = [2, 32], strides = [1, 1]} : vector<2x96xf32> to vector<2x32xf32>
    %15 = arith.addf %13, %14 : vector<2x32xf32>
    %16 = arith.negf %15 : vector<2x32xf32>
    %17 = math.exp %16 : vector<2x32xf32>
    %cst_11 = arith.constant 1.000000e+00 : f32
    %18 = vector.broadcast %cst_11 : f32 to vector<2x32xf32>
    %19 = arith.addf %18, %17 : vector<2x32xf32>
    %20 = arith.divf %18, %19 : vector<2x32xf32>
    %21 = vector.extract_strided_slice %11 {offsets = [0, 32], sizes = [2, 32], strides = [1, 1]} : vector<2x96xf32> to vector<2x32xf32>
    %22 = vector.extract_strided_slice %12 {offsets = [0, 32], sizes = [2, 32], strides = [1, 1]} : vector<2x96xf32> to vector<2x32xf32>
    %23 = arith.addf %21, %22 : vector<2x32xf32>
    %24 = arith.negf %23 : vector<2x32xf32>
    %25 = math.exp %24 : vector<2x32xf32>
    %cst_12 = arith.constant 1.000000e+00 : f32
    %26 = vector.broadcast %cst_12 : f32 to vector<2x32xf32>
    %27 = arith.addf %26, %25 : vector<2x32xf32>
    %28 = arith.divf %26, %27 : vector<2x32xf32>
    %29 = vector.extract_strided_slice %11 {offsets = [0, 64], sizes = [2, 32], strides = [1, 1]} : vector<2x96xf32> to vector<2x32xf32>
    %30 = vector.extract_strided_slice %12 {offsets = [0, 64], sizes = [2, 32], strides = [1, 1]} : vector<2x96xf32> to vector<2x32xf32>
    %31 = arith.addf %30, %9 : vector<2x32xf32>
    %32 = arith.mulf %20, %31 : vector<2x32xf32>
    %33 = arith.addf %29, %32 : vector<2x32xf32>
    %34 = math.tanh %33 : vector<2x32xf32>
    %cst_13 = arith.constant 1.000000e+00 : f32
    %35 = vector.broadcast %cst_13 : f32 to vector<2x32xf32>
    %36 = arith.subf %35, %28 : vector<2x32xf32>
    %37 = arith.mulf %36, %34 : vector<2x32xf32>
    %38 = arith.mulf %28, %10 : vector<2x32xf32>
    %39 = arith.addf %37, %38 : vector<2x32xf32>
    %c0_14 = arith.constant 0 : index
    %c0_15 = arith.constant 0 : index
    %40 = vector.load %arg6[%c0_14, %c0_15] : memref<2x256xf32, #tpu.memory_space<vmem>>, vector<2x32xf32>
    tpu.vector_store %arg6[%c0_14, %c0_15], %39 {strides = array<i32>} : memref<2x256xf32, #tpu.memory_space<vmem>>, vector<2x32xf32>,
    %41 = vector.extract_strided_slice %5 {offsets = [2, 0], sizes = [2, 96], strides = [1, 1]} : vector<16x96xf32> to vector<2x96xf32>
    %cst_16 = arith.constant dense<0.000000e+00> : vector<2x96xf32>
    %42 = tpu.matmul %39, %6, %cst_16 {dimension_numbers = #tpu.dot_dimension_numbers<[1], [0], [0], [1], [0, 0, 1, 1], [], []>} : vector<2x32xf32>, vector<32x96xf32>, vector<2x96xf32> -> vector<2x96xf32>
    %43 = vector.extract_strided_slice %41 {offsets = [0, 0], sizes = [2, 32], strides = [1, 1]} : vector<2x96xf32> to vector<2x32xf32>
    %44 = vector.extract_strided_slice %42 {offsets = [0, 0], sizes = [2, 32], strides = [1, 1]} : vector<2x96xf32> to vector<2x32xf32>
    %45 = arith.addf %43, %44 : vector<2x32xf32>
    %46 = arith.negf %45 : vector<2x32xf32>
    %47 = math.exp %46 : vector<2x32xf32>
    %cst_17 = arith.constant 1.000000e+00 : f32
    %48 = vector.broadcast %cst_17 : f32 to vector<2x32xf32>
    %49 = arith.addf %48, %47 : vector<2x32xf32>
    %50 = arith.divf %48, %49 : vector<2x32xf32>
    %51 = vector.extract_strided_slice %41 {offsets = [0, 32], sizes = [2, 32], strides = [1, 1]} : vector<2x96xf32> to vector<2x32xf32>
    %52 = vector.extract_strided_slice %42 {offsets = [0, 32], sizes = [2, 32], strides = [1, 1]} : vector<2x96xf32> to vector<2x32xf32>
    %53 = arith.addf %51, %52 : vector<2x32xf32>
    %54 = arith.negf %53 : vector<2x32xf32>
    %55 = math.exp %54 : vector<2x32xf32>
    %cst_18 = arith.constant 1.000000e+00 : f32
    %56 = vector.broadcast %cst_18 : f32 to vector<2x32xf32>
    %57 = arith.addf %56, %55 : vector<2x32xf32>
    %58 = arith.divf %56, %57 : vector<2x32xf32>
    %59 = vector.extract_strided_slice %41 {offsets = [0, 64], sizes = [2, 32], strides = [1, 1]} : vector<2x96xf32> to vector<2x32xf32>
    %60 = vector.extract_strided_slice %42 {offsets = [0, 64], sizes = [2, 32], strides = [1, 1]} : vector<2x96xf32> to vector<2x32xf32>
    %61 = arith.addf %60, %9 : vector<2x32xf32>
    %62 = arith.mulf %50, %61 : vector<2x32xf32>
    %63 = arith.addf %59, %62 : vector<2x32xf32>
    %64 = math.tanh %63 : vector<2x32xf32>
    %cst_19 = arith.constant 1.000000e+00 : f32
    %65 = vector.broadcast %cst_19 : f32 to vector<2x32xf32>
    %66 = arith.subf %65, %58 : vector<2x32xf32>
    %67 = arith.mulf %66, %64 : vector<2x32xf32>
    %68 = arith.mulf %58, %39 : vector<2x32xf32>
    %69 = arith.addf %67, %68 : vector<2x32xf32>
    %c0_20 = arith.constant 0 : index
    %c32 = arith.constant 32 : index
    %70 = vector.load %arg6[%c0_20, %c32] : memref<2x256xf32, #tpu.memory_space<vmem>>, vector<2x32xf32>
    tpu.vector_store %arg6[%c0_20, %c32], %69 {strides = array<i32>} : memref<2x256xf32, #tpu.memory_space<vmem>>, vector<2x32xf32>,
    %71 = vector.extract_strided_slice %5 {offsets = [4, 0], sizes = [2, 96], strides = [1, 1]} : vector<16x96xf32> to vector<2x96xf32>
    %cst_21 = arith.constant dense<0.000000e+00> : vector<2x96xf32>
    %72 = tpu.matmul %69, %6, %cst_21 {dimension_numbers = #tpu.dot_dimension_numbers<[1], [0], [0], [1], [0, 0, 1, 1], [], []>} : vector<2x32xf32>, vector<32x96xf32>, vector<2x96xf32> -> vector<2x96xf32>
    %73 = vector.extract_strided_slice %71 {offsets = [0, 0], sizes = [2, 32], strides = [1, 1]} : vector<2x96xf32> to vector<2x32xf32>
    %74 = vector.extract_strided_slice %72 {offsets = [0, 0], sizes = [2, 32], strides = [1, 1]} : vector<2x96xf32> to vector<2x32xf32>
    %75 = arith.addf %73, %74 : vector<2x32xf32>
    %76 = arith.negf %75 : vector<2x32xf32>
    %77 = math.exp %76 : vector<2x32xf32>
    %cst_22 = arith.constant 1.000000e+00 : f32
    %78 = vector.broadcast %cst_22 : f32 to vector<2x32xf32>
    %79 = arith.addf %78, %77 : vector<2x32xf32>
    %80 = arith.divf %78, %79 : vector<2x32xf32>
    %81 = vector.extract_strided_slice %71 {offsets = [0, 32], sizes = [2, 32], strides = [1, 1]} : vector<2x96xf32> to vector<2x32xf32>
    %82 = vector.extract_strided_slice %72 {offsets = [0, 32], sizes = [2, 32], strides = [1, 1]} : vector<2x96xf32> to vector<2x32xf32>
    %83 = arith.addf %81, %82 : vector<2x32xf32>
    %84 = arith.negf %83 : vector<2x32xf32>
    %85 = math.exp %84 : vector<2x32xf32>
    %cst_23 = arith.constant 1.000000e+00 : f32
    %86 = vector.broadcast %cst_23 : f32 to vector<2x32xf32>
    %87 = arith.addf %86, %85 : vector<2x32xf32>
    %88 = arith.divf %86, %87 : vector<2x32xf32>
    %89 = vector.extract_strided_slice %71 {offsets = [0, 64], sizes = [2, 32], strides = [1, 1]} : vector<2x96xf32> to vector<2x32xf32>
    %90 = vector.extract_strided_slice %72 {offsets = [0, 64], sizes = [2, 32], strides = [1, 1]} : vector<2x96xf32> to vector<2x32xf32>
    %91 = arith.addf %90, %9 : vector<2x32xf32>
    %92 = arith.mulf %80, %91 : vector<2x32xf32>
    %93 = arith.addf %89, %92 : vector<2x32xf32>
    %94 = math.tanh %93 : vector<2x32xf32>
    %cst_24 = arith.constant 1.000000e+00 : f32
    %95 = vector.broadcast %cst_24 : f32 to vector<2x32xf32>
    %96 = arith.subf %95, %88 : vector<2x32xf32>
    %97 = arith.mulf %96, %94 : vector<2x32xf32>
    %98 = arith.mulf %88, %69 : vector<2x32xf32>
    %99 = arith.addf %97, %98 : vector<2x32xf32>
    %c0_25 = arith.constant 0 : index
    %c64 = arith.constant 64 : index
    %100 = vector.load %arg6[%c0_25, %c64] : memref<2x256xf32, #tpu.memory_space<vmem>>, vector<2x32xf32>
    tpu.vector_store %arg6[%c0_25, %c64], %99 {strides = array<i32>} : memref<2x256xf32, #tpu.memory_space<vmem>>, vector<2x32xf32>,
    %101 = vector.extract_strided_slice %5 {offsets = [6, 0], sizes = [2, 96], strides = [1, 1]} : vector<16x96xf32> to vector<2x96xf32>
    %cst_26 = arith.constant dense<0.000000e+00> : vector<2x96xf32>
    %102 = tpu.matmul %99, %6, %cst_26 {dimension_numbers = #tpu.dot_dimension_numbers<[1], [0], [0], [1], [0, 0, 1, 1], [], []>} : vector<2x32xf32>, vector<32x96xf32>, vector<2x96xf32> -> vector<2x96xf32>
    %103 = vector.extract_strided_slice %101 {offsets = [0, 0], sizes = [2, 32], strides = [1, 1]} : vector<2x96xf32> to vector<2x32xf32>
    %104 = vector.extract_strided_slice %102 {offsets = [0, 0], sizes = [2, 32], strides = [1, 1]} : vector<2x96xf32> to vector<2x32xf32>
    %105 = arith.addf %103, %104 : vector<2x32xf32>
    %106 = arith.negf %105 : vector<2x32xf32>
    %107 = math.exp %106 : vector<2x32xf32>
    %cst_27 = arith.constant 1.000000e+00 : f32
    %108 = vector.broadcast %cst_27 : f32 to vector<2x32xf32>
    %109 = arith.addf %108, %107 : vector<2x32xf32>
    %110 = arith.divf %108, %109 : vector<2x32xf32>
    %111 = vector.extract_strided_slice %101 {offsets = [0, 32], sizes = [2, 32], strides = [1, 1]} : vector<2x96xf32> to vector<2x32xf32>
    %112 = vector.extract_strided_slice %102 {offsets = [0, 32], sizes = [2, 32], strides = [1, 1]} : vector<2x96xf32> to vector<2x32xf32>
    %113 = arith.addf %111, %112 : vector<2x32xf32>
    %114 = arith.negf %113 : vector<2x32xf32>
    %115 = math.exp %114 : vector<2x32xf32>
    %cst_28 = arith.constant 1.000000e+00 : f32
    %116 = vector.broadcast %cst_28 : f32 to vector<2x32xf32>
    %117 = arith.addf %116, %115 : vector<2x32xf32>
    %118 = arith.divf %116, %117 : vector<2x32xf32>
    %119 = vector.extract_strided_slice %101 {offsets = [0, 64], sizes = [2, 32], strides = [1, 1]} : vector<2x96xf32> to vector<2x32xf32>
    %120 = vector.extract_strided_slice %102 {offsets = [0, 64], sizes = [2, 32], strides = [1, 1]} : vector<2x96xf32> to vector<2x32xf32>
    %121 = arith.addf %120, %9 : vector<2x32xf32>
    %122 = arith.mulf %110, %121 : vector<2x32xf32>
    %123 = arith.addf %119, %122 : vector<2x32xf32>
    %124 = math.tanh %123 : vector<2x32xf32>
    %cst_29 = arith.constant 1.000000e+00 : f32
    %125 = vector.broadcast %cst_29 : f32 to vector<2x32xf32>
    %126 = arith.subf %125, %118 : vector<2x32xf32>
    %127 = arith.mulf %126, %124 : vector<2x32xf32>
    %128 = arith.mulf %118, %99 : vector<2x32xf32>
    %129 = arith.addf %127, %128 : vector<2x32xf32>
    %c0_30 = arith.constant 0 : index
    %c96 = arith.constant 96 : index
    %130 = vector.load %arg6[%c0_30, %c96] : memref<2x256xf32, #tpu.memory_space<vmem>>, vector<2x32xf32>
    tpu.vector_store %arg6[%c0_30, %c96], %129 {strides = array<i32>} : memref<2x256xf32, #tpu.memory_space<vmem>>, vector<2x32xf32>,
    %131 = vector.extract_strided_slice %5 {offsets = [8, 0], sizes = [2, 96], strides = [1, 1]} : vector<16x96xf32> to vector<2x96xf32>
    %cst_31 = arith.constant dense<0.000000e+00> : vector<2x96xf32>
    %132 = tpu.matmul %129, %6, %cst_31 {dimension_numbers = #tpu.dot_dimension_numbers<[1], [0], [0], [1], [0, 0, 1, 1], [], []>} : vector<2x32xf32>, vector<32x96xf32>, vector<2x96xf32> -> vector<2x96xf32>
    %133 = vector.extract_strided_slice %131 {offsets = [0, 0], sizes = [2, 32], strides = [1, 1]} : vector<2x96xf32> to vector<2x32xf32>
    %134 = vector.extract_strided_slice %132 {offsets = [0, 0], sizes = [2, 32], strides = [1, 1]} : vector<2x96xf32> to vector<2x32xf32>
    %135 = arith.addf %133, %134 : vector<2x32xf32>
    %136 = arith.negf %135 : vector<2x32xf32>
    %137 = math.exp %136 : vector<2x32xf32>
    %cst_32 = arith.constant 1.000000e+00 : f32
    %138 = vector.broadcast %cst_32 : f32 to vector<2x32xf32>
    %139 = arith.addf %138, %137 : vector<2x32xf32>
    %140 = arith.divf %138, %139 : vector<2x32xf32>
    %141 = vector.extract_strided_slice %131 {offsets = [0, 32], sizes = [2, 32], strides = [1, 1]} : vector<2x96xf32> to vector<2x32xf32>
    %142 = vector.extract_strided_slice %132 {offsets = [0, 32], sizes = [2, 32], strides = [1, 1]} : vector<2x96xf32> to vector<2x32xf32>
    %143 = arith.addf %141, %142 : vector<2x32xf32>
    %144 = arith.negf %143 : vector<2x32xf32>
    %145 = math.exp %144 : vector<2x32xf32>
    %cst_33 = arith.constant 1.000000e+00 : f32
    %146 = vector.broadcast %cst_33 : f32 to vector<2x32xf32>
    %147 = arith.addf %146, %145 : vector<2x32xf32>
    %148 = arith.divf %146, %147 : vector<2x32xf32>
    %149 = vector.extract_strided_slice %131 {offsets = [0, 64], sizes = [2, 32], strides = [1, 1]} : vector<2x96xf32> to vector<2x32xf32>
    %150 = vector.extract_strided_slice %132 {offsets = [0, 64], sizes = [2, 32], strides = [1, 1]} : vector<2x96xf32> to vector<2x32xf32>
    %151 = arith.addf %150, %9 : vector<2x32xf32>
    %152 = arith.mulf %140, %151 : vector<2x32xf32>
    %153 = arith.addf %149, %152 : vector<2x32xf32>
    %154 = math.tanh %153 : vector<2x32xf32>
    %cst_34 = arith.constant 1.000000e+00 : f32
    %155 = vector.broadcast %cst_34 : f32 to vector<2x32xf32>
    %156 = arith.subf %155, %148 : vector<2x32xf32>
    %157 = arith.mulf %156, %154 : vector<2x32xf32>
    %158 = arith.mulf %148, %129 : vector<2x32xf32>
    %159 = arith.addf %157, %158 : vector<2x32xf32>
    %c0_35 = arith.constant 0 : index
    %c128 = arith.constant 128 : index
    %160 = vector.load %arg6[%c0_35, %c128] : memref<2x256xf32, #tpu.memory_space<vmem>>, vector<2x32xf32>
    tpu.vector_store %arg6[%c0_35, %c128], %159 {strides = array<i32>} : memref<2x256xf32, #tpu.memory_space<vmem>>, vector<2x32xf32>,
    %161 = vector.extract_strided_slice %5 {offsets = [10, 0], sizes = [2, 96], strides = [1, 1]} : vector<16x96xf32> to vector<2x96xf32>
    %cst_36 = arith.constant dense<0.000000e+00> : vector<2x96xf32>
    %162 = tpu.matmul %159, %6, %cst_36 {dimension_numbers = #tpu.dot_dimension_numbers<[1], [0], [0], [1], [0, 0, 1, 1], [], []>} : vector<2x32xf32>, vector<32x96xf32>, vector<2x96xf32> -> vector<2x96xf32>
    %163 = vector.extract_strided_slice %161 {offsets = [0, 0], sizes = [2, 32], strides = [1, 1]} : vector<2x96xf32> to vector<2x32xf32>
    %164 = vector.extract_strided_slice %162 {offsets = [0, 0], sizes = [2, 32], strides = [1, 1]} : vector<2x96xf32> to vector<2x32xf32>
    %165 = arith.addf %163, %164 : vector<2x32xf32>
    %166 = arith.negf %165 : vector<2x32xf32>
    %167 = math.exp %166 : vector<2x32xf32>
    %cst_37 = arith.constant 1.000000e+00 : f32
    %168 = vector.broadcast %cst_37 : f32 to vector<2x32xf32>
    %169 = arith.addf %168, %167 : vector<2x32xf32>
    %170 = arith.divf %168, %169 : vector<2x32xf32>
    %171 = vector.extract_strided_slice %161 {offsets = [0, 32], sizes = [2, 32], strides = [1, 1]} : vector<2x96xf32> to vector<2x32xf32>
    %172 = vector.extract_strided_slice %162 {offsets = [0, 32], sizes = [2, 32], strides = [1, 1]} : vector<2x96xf32> to vector<2x32xf32>
    %173 = arith.addf %171, %172 : vector<2x32xf32>
    %174 = arith.negf %173 : vector<2x32xf32>
    %175 = math.exp %174 : vector<2x32xf32>
    %cst_38 = arith.constant 1.000000e+00 : f32
    %176 = vector.broadcast %cst_38 : f32 to vector<2x32xf32>
    %177 = arith.addf %176, %175 : vector<2x32xf32>
    %178 = arith.divf %176, %177 : vector<2x32xf32>
    %179 = vector.extract_strided_slice %161 {offsets = [0, 64], sizes = [2, 32], strides = [1, 1]} : vector<2x96xf32> to vector<2x32xf32>
    %180 = vector.extract_strided_slice %162 {offsets = [0, 64], sizes = [2, 32], strides = [1, 1]} : vector<2x96xf32> to vector<2x32xf32>
    %181 = arith.addf %180, %9 : vector<2x32xf32>
    %182 = arith.mulf %170, %181 : vector<2x32xf32>
    %183 = arith.addf %179, %182 : vector<2x32xf32>
    %184 = math.tanh %183 : vector<2x32xf32>
    %cst_39 = arith.constant 1.000000e+00 : f32
    %185 = vector.broadcast %cst_39 : f32 to vector<2x32xf32>
    %186 = arith.subf %185, %178 : vector<2x32xf32>
    %187 = arith.mulf %186, %184 : vector<2x32xf32>
    %188 = arith.mulf %178, %159 : vector<2x32xf32>
    %189 = arith.addf %187, %188 : vector<2x32xf32>
    %c0_40 = arith.constant 0 : index
    %c160 = arith.constant 160 : index
    %190 = vector.load %arg6[%c0_40, %c160] : memref<2x256xf32, #tpu.memory_space<vmem>>, vector<2x32xf32>
    tpu.vector_store %arg6[%c0_40, %c160], %189 {strides = array<i32>} : memref<2x256xf32, #tpu.memory_space<vmem>>, vector<2x32xf32>,
    %191 = vector.extract_strided_slice %5 {offsets = [12, 0], sizes = [2, 96], strides = [1, 1]} : vector<16x96xf32> to vector<2x96xf32>
    %cst_41 = arith.constant dense<0.000000e+00> : vector<2x96xf32>
    %192 = tpu.matmul %189, %6, %cst_41 {dimension_numbers = #tpu.dot_dimension_numbers<[1], [0], [0], [1], [0, 0, 1, 1], [], []>} : vector<2x32xf32>, vector<32x96xf32>, vector<2x96xf32> -> vector<2x96xf32>
    %193 = vector.extract_strided_slice %191 {offsets = [0, 0], sizes = [2, 32], strides = [1, 1]} : vector<2x96xf32> to vector<2x32xf32>
    %194 = vector.extract_strided_slice %192 {offsets = [0, 0], sizes = [2, 32], strides = [1, 1]} : vector<2x96xf32> to vector<2x32xf32>
    %195 = arith.addf %193, %194 : vector<2x32xf32>
    %196 = arith.negf %195 : vector<2x32xf32>
    %197 = math.exp %196 : vector<2x32xf32>
    %cst_42 = arith.constant 1.000000e+00 : f32
    %198 = vector.broadcast %cst_42 : f32 to vector<2x32xf32>
    %199 = arith.addf %198, %197 : vector<2x32xf32>
    %200 = arith.divf %198, %199 : vector<2x32xf32>
    %201 = vector.extract_strided_slice %191 {offsets = [0, 32], sizes = [2, 32], strides = [1, 1]} : vector<2x96xf32> to vector<2x32xf32>
    %202 = vector.extract_strided_slice %192 {offsets = [0, 32], sizes = [2, 32], strides = [1, 1]} : vector<2x96xf32> to vector<2x32xf32>
    %203 = arith.addf %201, %202 : vector<2x32xf32>
    %204 = arith.negf %203 : vector<2x32xf32>
    %205 = math.exp %204 : vector<2x32xf32>
    %cst_43 = arith.constant 1.000000e+00 : f32
    %206 = vector.broadcast %cst_43 : f32 to vector<2x32xf32>
    %207 = arith.addf %206, %205 : vector<2x32xf32>
    %208 = arith.divf %206, %207 : vector<2x32xf32>
    %209 = vector.extract_strided_slice %191 {offsets = [0, 64], sizes = [2, 32], strides = [1, 1]} : vector<2x96xf32> to vector<2x32xf32>
    %210 = vector.extract_strided_slice %192 {offsets = [0, 64], sizes = [2, 32], strides = [1, 1]} : vector<2x96xf32> to vector<2x32xf32>
    %211 = arith.addf %210, %9 : vector<2x32xf32>
    %212 = arith.mulf %200, %211 : vector<2x32xf32>
    %213 = arith.addf %209, %212 : vector<2x32xf32>
    %214 = math.tanh %213 : vector<2x32xf32>
    %cst_44 = arith.constant 1.000000e+00 : f32
    %215 = vector.broadcast %cst_44 : f32 to vector<2x32xf32>
    %216 = arith.subf %215, %208 : vector<2x32xf32>
    %217 = arith.mulf %216, %214 : vector<2x32xf32>
    %218 = arith.mulf %208, %189 : vector<2x32xf32>
    %219 = arith.addf %217, %218 : vector<2x32xf32>
    %c0_45 = arith.constant 0 : index
    %c192 = arith.constant 192 : index
    %220 = vector.load %arg6[%c0_45, %c192] : memref<2x256xf32, #tpu.memory_space<vmem>>, vector<2x32xf32>
    tpu.vector_store %arg6[%c0_45, %c192], %219 {strides = array<i32>} : memref<2x256xf32, #tpu.memory_space<vmem>>, vector<2x32xf32>,
    %221 = vector.extract_strided_slice %5 {offsets = [14, 0], sizes = [2, 96], strides = [1, 1]} : vector<16x96xf32> to vector<2x96xf32>
    %cst_46 = arith.constant dense<0.000000e+00> : vector<2x96xf32>
    %222 = tpu.matmul %219, %6, %cst_46 {dimension_numbers = #tpu.dot_dimension_numbers<[1], [0], [0], [1], [0, 0, 1, 1], [], []>} : vector<2x32xf32>, vector<32x96xf32>, vector<2x96xf32> -> vector<2x96xf32>
    %223 = vector.extract_strided_slice %221 {offsets = [0, 0], sizes = [2, 32], strides = [1, 1]} : vector<2x96xf32> to vector<2x32xf32>
    %224 = vector.extract_strided_slice %222 {offsets = [0, 0], sizes = [2, 32], strides = [1, 1]} : vector<2x96xf32> to vector<2x32xf32>
    %225 = arith.addf %223, %224 : vector<2x32xf32>
    %226 = arith.negf %225 : vector<2x32xf32>
    %227 = math.exp %226 : vector<2x32xf32>
    %cst_47 = arith.constant 1.000000e+00 : f32
    %228 = vector.broadcast %cst_47 : f32 to vector<2x32xf32>
    %229 = arith.addf %228, %227 : vector<2x32xf32>
    %230 = arith.divf %228, %229 : vector<2x32xf32>
    %231 = vector.extract_strided_slice %221 {offsets = [0, 32], sizes = [2, 32], strides = [1, 1]} : vector<2x96xf32> to vector<2x32xf32>
    %232 = vector.extract_strided_slice %222 {offsets = [0, 32], sizes = [2, 32], strides = [1, 1]} : vector<2x96xf32> to vector<2x32xf32>
    %233 = arith.addf %231, %232 : vector<2x32xf32>
    %234 = arith.negf %233 : vector<2x32xf32>
    %235 = math.exp %234 : vector<2x32xf32>
    %cst_48 = arith.constant 1.000000e+00 : f32
    %236 = vector.broadcast %cst_48 : f32 to vector<2x32xf32>
    %237 = arith.addf %236, %235 : vector<2x32xf32>
    %238 = arith.divf %236, %237 : vector<2x32xf32>
    %239 = vector.extract_strided_slice %221 {offsets = [0, 64], sizes = [2, 32], strides = [1, 1]} : vector<2x96xf32> to vector<2x32xf32>
    %240 = vector.extract_strided_slice %222 {offsets = [0, 64], sizes = [2, 32], strides = [1, 1]} : vector<2x96xf32> to vector<2x32xf32>
    %241 = arith.addf %240, %9 : vector<2x32xf32>
    %242 = arith.mulf %230, %241 : vector<2x32xf32>
    %243 = arith.addf %239, %242 : vector<2x32xf32>
    %244 = math.tanh %243 : vector<2x32xf32>
    %cst_49 = arith.constant 1.000000e+00 : f32
    %245 = vector.broadcast %cst_49 : f32 to vector<2x32xf32>
    %246 = arith.subf %245, %238 : vector<2x32xf32>
    %247 = arith.mulf %246, %244 : vector<2x32xf32>
    %248 = arith.mulf %238, %219 : vector<2x32xf32>
    %249 = arith.addf %247, %248 : vector<2x32xf32>
    %c0_50 = arith.constant 0 : index
    %c224 = arith.constant 224 : index
    %250 = vector.load %arg6[%c0_50, %c224] : memref<2x256xf32, #tpu.memory_space<vmem>>, vector<2x32xf32>
    tpu.vector_store %arg6[%c0_50, %c224], %249 {strides = array<i32>} : memref<2x256xf32, #tpu.memory_space<vmem>>, vector<2x32xf32>,
    return
  }
  func.func @transform_0(%arg0: i32) -> (i32, i32) {
    %c0_i32 = arith.constant 0 : i32
    %c0_i32_0 = arith.constant 0 : i32
    %c0_i32_1 = arith.constant 0 : i32
    return %c0_i32, %c0_i32_0 : i32, i32
  }
  func.func @transform_1(%arg0: i32) -> (i32, i32) {
    %c0_i32 = arith.constant 0 : i32
    %c0_i32_0 = arith.constant 0 : i32
    %c0_i32_1 = arith.constant 0 : i32
    return %c0_i32, %c0_i32_0 : i32, i32
  }
  func.func @transform_2(%arg0: i32) -> (i32, i32) {
    %c0_i32 = arith.constant 0 : i32
    %c0_i32_0 = arith.constant 0 : i32
    %c0_i32_1 = arith.constant 0 : i32
    return %c0_i32, %c0_i32_0 : i32, i32
  }
  func.func @transform_3(%arg0: i32) -> (i32, i32) {
    %c0_i32 = arith.constant 0 : i32
    %c0_i32_0 = arith.constant 0 : i32
    %c0_i32_1 = arith.constant 0 : i32
    return %c0_i32, %c0_i32_0 : i32, i32
  }
  func.func @transform_4(%arg0: i32) -> (i32, i32) {
    %c0_i32 = arith.constant 0 : i32
    %c0_i32_0 = arith.constant 0 : i32
    %c0_i32_1 = arith.constant 0 : i32
    return %c0_i32, %c0_i32_0 : i32, i32
  }
  func.func @transform_5(%arg0: i32) -> (i32, i32) {
    %c0_i32 = arith.constant 0 : i32
    %c0_i32_0 = arith.constant 0 : i32
    %c0_i32_1 = arith.constant 0 : i32
    return %c0_i32, %c0_i32_0 : i32, i32
  }
}

</mosaic_0001>

<bundles_post_ra>
// kernel: encoder_forward.1
= control target key start
LH: loop header
LB: loop body
LE: loop exit
PB: predicated region body
PF: predicated region fallthrough
CT: control target
= control target key end

     0   :  { %v1360_v0 = vmov 0.0|0.0   ;;  %vm1361_vm0 = vmmov 0   ;;  %v1362_v4 = vmov 0.0   ;;  %vm33_vm1 = vcmask 261120   ;;  %s1366_s14 = smov 32   ;;  %s1630_s1 = inlined_call_operand.vmem [shape: f32[32,96], index: 1, kind: input, shape index: {}]   ;;  %s1631_s2 = inlined_call_operand.vmem [shape: f32[32,96], index: 2, kind: input, shape index: {}]   ;;  %s1632_s0 = inlined_call_operand.vmem [shape: f32[16,32], index: 0, kind: input, shape index: {}]   ;;  %s1633_s4 = inlined_call_operand.vmem [shape: f32[1,32], index: 4, kind: input, shape index: {}]   ;;  %s1634_s3 = inlined_call_operand.vmem [shape: f32[1,96], index: 3, kind: input, shape index: {}]   ;;  %s1635_s5 = inlined_call_operand.vmem [shape: f32[2,256], index: 5, kind: output, shape index: {}]  }
   0x1   :  { %1257 = vmatprep.subr.bf16.mxu1 %v1360_v0  ;;  %v22_v1 = vld [vmem:[%s1630_s1] sm:$0xff]  ;;  %v23_v2 = vld [vmem:[%s1630_s1 + $0x8] sm:$0xff]  ;;  %1169 = vmatprep.mubr.msk.f32.mxu1 %vm1361_vm0, %v1362_v4  ;;  %v24_v7 = vld [vmem:[%s1630_s1 + $0x10] sm:$0xff]  ;;  %vm239_vm2 = vcmask 254976   ;;  %vm358_vm3 = vcmask 517376   ;;  %vm480_vm4 = vcmask 779776  }
   0x2   :  { %v115_v3 = vld [vmem:[%s1631_s2] sm:$0xff]  ;;  %v1249_v5 = vpack.c.bf16 %v23_v2, %v22_v1  ;;  %v116_v6 = vld [vmem:[%s1631_s2 + $0x8] sm:$0xff]  ;;  %v25_v8 = vld [vmem:[%s1630_s1 + $0x18] sm:$0xff]  ;;  %vm603_vm5 = vcmask 1042176  }
   0x3   :  { %v1418_v9 = vpack.c.bf16 %v116_v6, %v115_v3  ;;  %v1253_v10 = vpack.c.bf16 %v25_v8, %v24_v7  ;;  %v117_v11 = vld [vmem:[%s1631_s2 + $0x10] sm:$0xff]  ;;  %v118_v12 = vld [vmem:[%s1631_s2 + $0x18] sm:$0xff]  ;;  %v20_v13 = vld [vmem:[%s1632_s0] sm:$0xff]  ;;  %s1363_s2 = smov 64  }
   0x4   :  { %1250 = vmatprep.subr.bf16.mxu0 %v1249_v5  ;;  %1158 = vmatprep.mubr.msk.f32.mxu0 %vm33_vm1, %v20_v13  ;;  %v1088_v14 = vld [vmem:[%s1633_s4] ss:$0 sm:$0xff]  ;;  %v1434_v15 = vpack.c.bf16 %v118_v12, %v117_v11  ;;  %v21_v16 = vld [vmem:[%s1632_s0 + $0x8] sm:$0xff] }
   0x5   :  { %1259 = vmatpush3.bf16.msra.mxu1 %v1418_v9  ;;  %1252 = vmatpush3.bf16.msra.mxu0 %v1249_v5  ;;  %v1085_v20 = vld [vmem:[%s1634_s3] ss:$0 sm:$0xff]  ;;  %s1364_s3 = smov 96  }
   0x6   :  { %1260 = vmatprep.subr.bf16.mxu1 %v1360_v0  ;;  %1254 = vmatprep.subr.bf16.mxu0 %v1253_v10 }
   0x7   :  { %205 = vrot.lane.b32.xlu0 %v1088_v14, %s1363_s2 }
   0x9   :  { %1262 = vmatpush3.bf16.msra.mxu1 %v1434_v15  ;;  %1256 = vmatpush3.bf16.msra.mxu0 %v1253_v10 }
   0xa   :  { %1263 = vmatprep.subr.bf16.mxu0 %v1360_v0  ;;  %1269 = vmatprep.subr.bf16.mxu1 %v1360_v0 }
   0xc   :  { %1170 = vmatmul.mubr.f32.vlgmr.msra.gmra.mrb[0].mxu1 %v1362_v4  ;;  %1159 = vmatmul.mubr.msk.f32.vlgmr.msra.gmra.mrb[0].mxu0 %vm33_vm1, %v21_v16 }
   0xd   :  { %1265 = vmatpush3.bf16.msra.mxu0 %v1418_v9  ;;  %1180 = vmatprep.mubr.msk.f32.mxu0 %vm1361_vm0, %v1362_v4 }
   0xe   :  { %1266 = vmatprep.subr.bf16.mxu0 %v1360_v0  ;;  %1271 = vmatpush3.bf16.msra.mxu1 %v1418_v9 }
   0xf   :  { %1272 = vmatprep.subr.bf16.mxu1 %v1360_v0  ;;  %1191 = vmatprep.mubr.msk.f32.mxu1 %vm1361_vm0, %v1362_v4 }
  0x11   :  { %1268 = vmatpush3.bf16.msra.mxu0 %v1434_v15 }
  0x12   :  { %1274 = vmatpush3.bf16.msra.mxu1 %v1434_v15  ;;  %1275 = vmatprep.subr.bf16.mxu0 %v1360_v0 }
  0x13   :  { %1281 = vmatprep.subr.bf16.mxu1 %v1360_v0 }
  0x79   :  { %v1458_v17 = vpop.permute.xlu0 %205 }
  0xdf   :  { %v194_v18 = vpop.f32.mrb[0].mxu1  ;;  %v1160_v19 = vpop.f32.mrb[0].mxu0 }
  0xe0   :  { %v208_v21 = vadd.f32 %v1458_v17, %v194_v18  ;;  %v1464_v22 = vadd.f32 %v1160_v19, %v1085_v20  ;;  %v1171_v23 = vpop.f32.mrb[1].mxu1  ;;  %v106_v24 = vpop.f32.mrb[1].mxu0 }
  0xe1   :  { %v1467_v25 = vadd.f32 %v1085_v20, %v106_v24 }
  0xe2   :  { %210 = vrot.lane.b32.xlu0 %v208_v21, %s1363_s2 }
  0xe3   :  { %v198_v26 = vadd.f32 %v194_v18, %v1467_v25 }
  0xe5   :  { %v1089_v27 = vmul.f32 -1.442695, %v198_v26 }
  0xe7   :  { %1312 = vpow2.f32 %v1089_v27 }
  0xf1   :  { %v1313_v28 = vpop.eup %1312 }
  0xf2   :  { %v202_v29 = vadd.f32 1.0, %v1313_v28 }
  0xf4   :  { %1314 = vrcp.f32 %v202_v29 }
  0xfe   :  { %v1315_v30 = vpop.eup %1314 }
  0xff   :  { %v220_v36 = vsub.f32 1.0, %v1315_v30  ;;  %v226_v38 = vmul.f32 0.0, %v1315_v30 }
 0x154   :  { %v211_v31 = vpop.permute.xlu0 %210 }
 0x155   :  { %v213_v32 = vmul.f32 %v1315_v30, %v211_v31 }
 0x157   :  { %215 = vrot.lane.b32.xlu1 %v213_v32, %s1363_s2 }
 0x1c9   :  { %v216_v33 = vpop.permute.xlu1 %215 }
 0x1ca   :  { %v218_v34 = vadd.f32 %v216_v33, %v1467_v25 }
 0x1cc   :  { %1316 = vtanh.f32 %v218_v34 }
 0x1d6   :  { %v1317_v35 = vpop.eup %1316 }
 0x1d7   :  { %222 = vrot.lane.b32.xlu1 %v1317_v35, %s1364_s3 }
 0x249   :  { %v223_v37 = vpop.permute.xlu1 %222 }
 0x24a   :  { %v225_v39 = vmul.f32 %v223_v37, %v220_v36 }
 0x24c   :  { %v1473_v40 = vadd.f32 %v226_v38, %v225_v39 }
 0x24e   :  { %241 = vrot.lane.b32.xlu0 %v1473_v40, %s1364_s3  ;;  %v344_v58 = vrot.slane %v1473_v40, 6 }
 0x2c0   :  { %v242_v41 = vpop.permute.xlu0 %241 }
 0x2c1   :  { %1181 = vmatmul.mubr.msk.f32.vlgmr.msra.gmra.mrb[2].mxu0 %vm33_vm1, %v242_v41 }
 0x2c2   :  { %1277 = vmatpush3.bf16.msra.mxu0 %v1418_v9  ;;  %1202 = vmatprep.mubr.msk.f32.mxu0 %vm1361_vm0, %v1362_v4 }
 0x2c3   :  { %1278 = vmatprep.subr.bf16.mxu0 %v1360_v0 }
 0x2c6   :  { %1280 = vmatpush3.bf16.msra.mxu0 %v1434_v15 }
 0x2c7   :  { %1287 = vmatprep.subr.bf16.mxu0 %v1360_v0 }
 0x394   :  { %v311_v42 = vpop.f32.mrb[2].mxu0 }
 0x395   :  { %v325_v43 = vadd.f32 %v311_v42, %v1458_v17  ;;  %v1182_v44 = vpop.f32.mrb[3].mxu0  ;;  %v316_v46 = vrot.slane %v311_v42, 6 }
 0x397   :  { %v327_v45 = vrot.slane %v325_v43, 6  ;;  %v318_v47 = vadd.f32 %v316_v46, %v1467_v25 }
 0x399   :  { %328 = vrot.lane.b32.xlu1 %v327_v45, %s1363_s2  ;;  %v1091_v48 = vmul.f32 -1.442695, %v318_v47 }
 0x39b   :  { %1318 = vpow2.f32 %v1091_v48 }
 0x3a5   :  { %v1319_v49 = vpop.eup %1318 }
 0x3a6   :  { %v322_v50 = vadd.f32 1.0, %v1319_v49 }
 0x3a8   :  { %1320 = vrcp.f32 %v322_v50 }
 0x3b2   :  { %v1321_v51 = vpop.eup %1320 }
 0x3b3   :  { %v338_v57 = vsub.f32 1.0, %v1321_v51  ;;  %v346_v61 = vmul.f32 %v1321_v51, %v344_v58 }
 0x40b   :  { %v329_v52 = vpop.permute.xlu1 %328 }
 0x40c   :  { %v331_v53 = vmul.f32 %v1321_v51, %v329_v52 }
 0x40e   :  { %333 = vrot.lane.b32.xlu0 %v331_v53, %s1363_s2 }
 0x480   :  { %v334_v54 = vpop.permute.xlu0 %333 }
 0x481   :  { %v336_v55 = vadd.f32 %v334_v54, %v1467_v25 }
 0x483   :  { %1322 = vtanh.f32 %v336_v55 }
 0x48d   :  { %v1323_v56 = vpop.eup %1322 }
 0x48e   :  { %340 = vrot.lane.b32.xlu1 %v1323_v56, %s1364_s3 }
 0x500   :  { %v341_v59 = vpop.permute.xlu1 %340 }
 0x501   :  { %v343_v60 = vmul.f32 %v341_v59, %v338_v57 }
 0x503   :  { %v1491_v62 = vadd.f32 %v346_v61, %v343_v60 }
 0x505   :  { %v360_v63 = vrot.slane %v1491_v62, 2  ;;  %v464_v23 = vrot.slane %v1491_v62, 6 }
 0x507   :  { %361 = vrot.lane.b32.xlu0 %v360_v63, %s1364_s3 }
 0x579   :  { %v362_v1 = vpop.permute.xlu0 %361 }
 0x57a   :  { %1192 = vmatmul.mubr.msk.f32.vlgmr.msra.gmra.mrb[2].mxu1 %vm33_vm1, %v362_v1 }
 0x57b   :  { %1283 = vmatpush3.bf16.msra.mxu1 %v1418_v9  ;;  %1213 = vmatprep.mubr.msk.f32.mxu1 %vm1361_vm0, %v1362_v4 }
 0x57c   :  { %1284 = vmatprep.subr.bf16.mxu1 %v1360_v0 }
 0x57f   :  { %1286 = vmatpush3.bf16.msra.mxu1 %v1434_v15 }
 0x580   :  { %1293 = vmatprep.subr.bf16.mxu1 %v1360_v0 }
 0x64d   :  { %v431_v2 = vpop.f32.mrb[2].mxu1 }
 0x64e   :  { %v445_v3 = vadd.f32 %v431_v2, %v1458_v17  ;;  %v1193_v5 = vpop.f32.mrb[3].mxu1  ;;  %v436_v7 = vrot.slane %v431_v2, 4 }
 0x650   :  { %v447_v6 = vrot.slane %v445_v3, 4  ;;  %v438_v8 = vadd.f32 %v436_v7, %v1467_v25 }
 0x652   :  { %448 = vrot.lane.b32.xlu1 %v447_v6, %s1363_s2  ;;  %v1093_v10 = vmul.f32 -1.442695, %v438_v8 }
 0x654   :  { %1324 = vpow2.f32 %v1093_v10 }
 0x65e   :  { %v1325_v11 = vpop.eup %1324 }
 0x65f   :  { %v442_v12 = vadd.f32 1.0, %v1325_v11 }
 0x661   :  { %1326 = vrcp.f32 %v442_v12 }
 0x66b   :  { %v1327_v13 = vpop.eup %1326 }
 0x66c   :  { %v458_v21 = vsub.f32 1.0, %v1327_v13  ;;  %v466_v26 = vmul.f32 %v1327_v13, %v464_v23 }
 0x6c4   :  { %v449_v14 = vpop.permute.xlu1 %448 }
 0x6c5   :  { %v451_v16 = vmul.f32 %v1327_v13, %v449_v14 }
 0x6c7   :  { %453 = vrot.lane.b32.xlu0 %v451_v16, %s1363_s2 }
 0x739   :  { %v454_v18 = vpop.permute.xlu0 %453 }
 0x73a   :  { %v456_v19 = vadd.f32 %v454_v18, %v1467_v25 }
 0x73c   :  { %1328 = vtanh.f32 %v456_v19 }
 0x746   :  { %v1329_v20 = vpop.eup %1328 }
 0x747   :  { %460 = vrot.lane.b32.xlu1 %v1329_v20, %s1364_s3 }
 0x7b9   :  { %v461_v24 = vpop.permute.xlu1 %460 }
 0x7ba   :  { %v463_v27 = vmul.f32 %v461_v24, %v458_v21 }
 0x7bc   :  { %v1509_v28 = vadd.f32 %v466_v26, %v463_v27 }
 0x7be   :  { %v482_v29 = vrot.slane %v1509_v28, 4  ;;  %v586_v48 = vrot.slane %v1509_v28, 6 }
 0x7c0   :  { %483 = vrot.lane.b32.xlu0 %v482_v29, %s1364_s3 }
 0x832   :  { %v484_v30 = vpop.permute.xlu0 %483 }
 0x833   :  { %1203 = vmatmul.mubr.msk.f32.vlgmr.msra.gmra.mrb[4].mxu0 %vm33_vm1, %v484_v30 }
 0x834   :  { %1289 = vmatpush3.bf16.msra.mxu0 %v1418_v9  ;;  %1224 = vmatprep.mubr.msk.f32.mxu0 %vm1361_vm0, %v1362_v4 }
 0x835   :  { %1290 = vmatprep.subr.bf16.mxu0 %v1360_v0 }
 0x838   :  { %1292 = vmatpush3.bf16.msra.mxu0 %v1434_v15 }
 0x839   :  { %1299 = vmatprep.subr.bf16.mxu0 %v1360_v0 }
 0x906   :  { %v553_v31 = vpop.f32.mrb[4].mxu0 }
 0x907   :  { %v567_v32 = vadd.f32 %v553_v31, %v1458_v17  ;;  %v1204_v33 = vpop.f32.mrb[5].mxu0  ;;  %v558_v35 = vrot.slane %v553_v31, 2 }
 0x909   :  { %v569_v34 = vrot.slane %v567_v32, 2  ;;  %v560_v36 = vadd.f32 %v558_v35, %v1467_v25 }
 0x90b   :  { %570 = vrot.lane.b32.xlu1 %v569_v34, %s1363_s2  ;;  %v1095_v37 = vmul.f32 -1.442695, %v560_v36 }
 0x90d   :  { %1330 = vpow2.f32 %v1095_v37 }
 0x917   :  { %v1331_v38 = vpop.eup %1330 }
 0x918   :  { %v564_v39 = vadd.f32 1.0, %v1331_v38 }
 0x91a   :  { %1332 = vrcp.f32 %v564_v39 }
 0x924   :  { %v1333_v41 = vpop.eup %1332 }
 0x925   :  { %v580_v47 = vsub.f32 1.0, %v1333_v41  ;;  %v588_v50 = vmul.f32 %v1333_v41, %v586_v48 }
 0x97d   :  { %v571_v42 = vpop.permute.xlu1 %570 }
 0x97e   :  { %v573_v43 = vmul.f32 %v1333_v41, %v571_v42 }
 0x980   :  { %575 = vrot.lane.b32.xlu0 %v573_v43, %s1363_s2 }
 0x9f2   :  { %v576_v44 = vpop.permute.xlu0 %575 }
 0x9f3   :  { %v578_v45 = vadd.f32 %v576_v44, %v1467_v25 }
 0x9f5   :  { %1334 = vtanh.f32 %v578_v45 }
 0x9ff   :  { %v1335_v46 = vpop.eup %1334 }
 0xa00   :  { %582 = vrot.lane.b32.xlu1 %v1335_v46, %s1364_s3 }
 0xa72   :  { %v583_v49 = vpop.permute.xlu1 %582 }
 0xa73   :  { %v585_v51 = vmul.f32 %v583_v49, %v580_v47 }
 0xa75   :  { %v1527_v52 = vadd.f32 %v588_v50, %v585_v51 }
 0xa77   :  { %v605_v53 = vrot.slane %v1527_v52, 6 }
 0xa79   :  { %606 = vrot.lane.b32.xlu0 %v605_v53, %s1364_s3 }
 0xaeb   :  { %v607_v54 = vpop.permute.xlu0 %606 }
 0xaec   :  { %1214 = vmatmul.mubr.msk.f32.vlgmr.msra.gmra.mrb[4].mxu1 %vm33_vm1, %v607_v54 }
 0xaed   :  { %1295 = vmatpush3.bf16.msra.mxu1 %v1418_v9  ;;  %1235 = vmatprep.mubr.msk.f32.mxu1 %vm1361_vm0, %v1362_v4 }
 0xaee   :  { %1296 = vmatprep.subr.bf16.mxu1 %v1360_v0 }
 0xaf1   :  { %1298 = vmatpush3.bf16.msra.mxu1 %v1434_v15 }
 0xbbf   :  { %v676_v25 = vpop.f32.mrb[4].mxu1 }
 0xbc0   :  { %v687_v55 = vadd.f32 %v676_v25, %v1458_v17  ;;  %v1215_v56 = vpop.f32.mrb[5].mxu1  ;;  %v680_v57 = vadd.f32 %v676_v25, %v1464_v22 }
 0xbc2   :  { %689 = vrot.lane.b32.xlu1 %v687_v55, %s1363_s2  ;;  %v1097_v58 = vmul.f32 -1.442695, %v680_v57 }
 0xbc4   :  { %1336 = vpow2.f32 %v1097_v58 }
 0xbce   :  { %v1337_v59 = vpop.eup %1336 }
 0xbcf   :  { %v684_v60 = vadd.f32 1.0, %v1337_v59 }
 0xbd1   :  { %1338 = vrcp.f32 %v684_v60 }
 0xbdb   :  { %v1339_v61 = vpop.eup %1338 }
 0xbdc   :  { %v699_v6 = vsub.f32 1.0, %v1339_v61  ;;  %v706_v8 = vmul.f32 %v1339_v61, %v605_v53 }
 0xc34   :  { %v690_v63 = vpop.permute.xlu1 %689 }
 0xc35   :  { %v692_v1 = vmul.f32 %v1339_v61, %v690_v63 }
 0xc37   :  { %694 = vrot.lane.b32.xlu0 %v692_v1, %s1363_s2 }
 0xca9   :  { %v695_v2 = vpop.permute.xlu0 %694 }
 0xcaa   :  { %v697_v3 = vadd.f32 %v695_v2, %v1464_v22 }
 0xcac   :  { %1340 = vtanh.f32 %v697_v3 }
 0xcb6   :  { %v1341_v5 = vpop.eup %1340 }
 0xcb7   :  { %701 = vrot.lane.b32.xlu1 %v1341_v5, %s1364_s3 }
 0xd29   :  { %v702_v7 = vpop.permute.xlu1 %701 }
 0xd2a   :  { %v704_v10 = vmul.f32 %v702_v7, %v699_v6 }
 0xd2c   :  { %v1543_v11 = vadd.f32 %v706_v8, %v704_v10  ;;  %v1365_v10 = vmov 1983009808  }
 0xd2e   :  { %720 = vrot.lane.b32.xlu0 %v1543_v11, %s1364_s3  ;;  %v823_v30 = vrot.slane %v1543_v11, 6 }
 0xda0   :  { %v721_v12 = vpop.permute.xlu0 %720 }
 0xda1   :  { %1225 = vmatmul.mubr.msk.f32.vlgmr.msra.gmra.mrb[6].mxu0 %vm33_vm1, %v721_v12  ;;  %v230_v12 = vunpack.c.l.s4 %v1365_v10 }
 0xda2   :  { %1301 = vmatpush3.bf16.msra.mxu0 %v1418_v9  ;;  %1246 = vmatprep.mubr.msk.f32.mxu0 %vm1361_vm0, %v1362_v4 }
 0xda3   :  { %1302 = vmatprep.subr.bf16.mxu0 %v1360_v0 }
 0xda6   :  { %1304 = vmatpush3.bf16.msra.mxu0 %v1434_v15 }
 0xe74   :  { %v790_v13 = vpop.f32.mrb[6].mxu0 }
 0xe75   :  { %v804_v14 = vadd.f32 %v790_v13, %v1458_v17  ;;  %v1226_v16 = vpop.f32.mrb[7].mxu0  ;;  %v795_v19 = vrot.slane %v790_v13, 6  ;;  %v232_v13 = vlaneseq }
 0xe77   :  { %v806_v18 = vrot.slane %v804_v14, 6  ;;  %v797_v20 = vadd.f32 %v795_v19, %v1464_v22  ;;  %v231_v14 = vunpack.c.0.s8 %v230_v12  ;;  %v233_v16 = vshrl.u32 %v232_v13, 7 }
 0xe79   :  { %807 = vrot.lane.b32.xlu1 %v806_v18, %s1363_s2  ;;  %v1099_v21 = vmul.f32 -1.442695, %v797_v20 }
 0xe7b   :  { %1342 = vpow2.f32 %v1099_v21  ;;  %v591_v21 = vcombine.high %v1527_v52, %v1527_v52 }
 0xe85   :  { %v1343_v9 = vpop.eup %1342 }
 0xe86   :  { %v801_v23 = vadd.f32 1.0, %v1343_v9 }
 0xe88   :  { %1344 = vrcp.f32 %v801_v23  ;;  %v469_v23 = vcombine.high %v1509_v28, %v1509_v28 }
 0xe92   :  { %v1345_v4 = vpop.eup %1344 }
 0xe93   :  { %v817_v29 = vsub.f32 1.0, %v1345_v4  ;;  %v825_v33 = vmul.f32 %v1345_v4, %v823_v30 }
 0xeeb   :  { %v808_v24 = vpop.permute.xlu1 %807 }
 0xeec   :  { %v810_v0 = vmul.f32 %v1345_v4, %v808_v24 }
 0xeee   :  { %812 = vrot.lane.b32.xlu0 %v810_v0, %s1363_s2 }
 0xf60   :  { %v813_v15 = vpop.permute.xlu0 %812 }
 0xf61   :  { %v815_v26 = vadd.f32 %v813_v15, %v1464_v22 }
 0xf63   :  { %1346 = vtanh.f32 %v815_v26 }
 0xf6d   :  { %v1347_v27 = vpop.eup %1346 }
 0xf6e   :  { %819 = vrot.lane.b32.xlu1 %v1347_v27, %s1364_s3 }
 0xfe0   :  { %v820_v31 = vpop.permute.xlu1 %819 }
 0xfe1   :  { %v822_v32 = vmul.f32 %v820_v31, %v817_v29 }
 0xfe3   :  { %v1560_v34 = vadd.f32 %v825_v33, %v822_v32 }
 0xfe5   :  { %v838_v35 = vrot.slane %v1560_v34, 2  ;;  %v942_v25 = vrot.slane %v1560_v34, 6 }
 0xfe7   :  { %839 = vrot.lane.b32.xlu0 %v838_v35, %s1364_s3 }
0x1059   :  { %v840_v36 = vpop.permute.xlu0 %839 }
0x105a   :  { %1236 = vmatmul.mubr.msk.f32.vlgmr.msra.gmra.mrb[6].mxu1 %vm33_vm1, %v840_v36 }
0x112d   :  { %v909_v37 = vpop.f32.mrb[6].mxu1 }
0x112e   :  { %v923_v38 = vadd.f32 %v909_v37, %v1458_v17  ;;  %v1237_v39 = vpop.f32.mrb[7].mxu1  ;;  %v914_v42 = vrot.slane %v909_v37, 4 }
0x1130   :  { %v925_v41 = vrot.slane %v923_v38, 4  ;;  %v916_v43 = vadd.f32 %v914_v42, %v1464_v22 }
0x1132   :  { %926 = vrot.lane.b32.xlu1 %v925_v41, %s1363_s2  ;;  %v1101_v44 = vmul.f32 -1.442695, %v916_v43 }
0x1134   :  { %1348 = vpow2.f32 %v1101_v44 }
0x113e   :  { %v1349_v45 = vpop.eup %1348 }
0x113f   :  { %v920_v46 = vadd.f32 1.0, %v1349_v45 }
0x1141   :  { %1350 = vrcp.f32 %v920_v46 }
0x114b   :  { %v1351_v47 = vpop.eup %1350 }
0x114c   :  { %v936_v54 = vsub.f32 1.0, %v1351_v47  ;;  %v944_v56 = vmul.f32 %v1351_v47, %v942_v25 }
0x11a4   :  { %v927_v48 = vpop.permute.xlu1 %926 }
0x11a5   :  { %v929_v49 = vmul.f32 %v1351_v47, %v927_v48 }
0x11a7   :  { %931 = vrot.lane.b32.xlu0 %v929_v49, %s1363_s2 }
0x1219   :  { %v932_v50 = vpop.permute.xlu0 %931 }
0x121a   :  { %v934_v51 = vadd.f32 %v932_v50, %v1464_v22 }
0x121c   :  { %1352 = vtanh.f32 %v934_v51 }
0x1226   :  { %v1353_v53 = vpop.eup %1352 }
0x1227   :  { %938 = vrot.lane.b32.xlu1 %v1353_v53, %s1364_s3 }
0x1299   :  { %v939_v55 = vpop.permute.xlu1 %938 }
0x129a   :  { %v941_v57 = vmul.f32 %v939_v55, %v936_v54 }
0x129c   :  { %v1572_v58 = vadd.f32 %v944_v56, %v941_v57 }
0x129e   :  { %v959_v59 = vrot.slane %v1572_v58, 4  ;;  %v947_v30 = vcombine.high %v1572_v58, %v1572_v58  ;;  %v1063_v33 = vrot.slane %v1572_v58, 6 }
0x12a0   :  { %960 = vrot.lane.b32.xlu0 %v959_v59, %s1364_s3 }
0x1312   :  { %v961_v60 = vpop.permute.xlu0 %960 }
0x1313   :  { %1247 = vmatmul.mubr.msk.f32.vlgmr.msra.gmra.mrb[8].mxu0 %vm33_vm1, %v961_v60 }
0x13e6   :  { %v1030_v61 = vpop.f32.mrb[8].mxu0 }
0x13e7   :  { %v1044_v63 = vadd.f32 %v1030_v61, %v1458_v17  ;;  %v1248_v1 = vpop.f32.mrb[9].mxu0  ;;  %v1035_v3 = vrot.slane %v1030_v61, 2  ;;  %v234_v17 = vsub.s32 %v231_v14, %v233_v16 }
0x13e9   :  { %v1046_v2 = vrot.slane %v1044_v63, 2  ;;  %v1037_v5 = vadd.f32 %v1035_v3, %v1464_v22  ;;  %v235_v9 = vrot.slane %v1473_v40, %v234_v17  ;;  %v476_v4 = vrot.slane %v469_v23, %v234_v17 }
0x13ea   :  { %v598_v24 = vrot.slane %v591_v21, %v234_v17  ;;  %v355_v15 = vrot.slane %v1491_v62, %v234_v17  ;;  %v715_v29 = vrot.slane %v1543_v11, %v234_v17  ;;  %v954_v31 = vrot.slane %v947_v30, %v234_v17 }
0x13eb   :  { %1047 = vrot.lane.b32.xlu1 %v1046_v2, %s1363_s2  ;;  %v1103_v6 = vmul.f32 -1.442695, %v1037_v5  ;;  %v834_v35 = vrot.slane %v1560_v34, %v234_v17 }
0x13ec   :  { %v599_v0 = vcombine.high %v598_v24, %v598_v24  ;;  %v356_v40 = vcombine.high %v355_v15, %v355_v15 }
0x13ed   :  { %1354 = vpow2.f32 %v1103_v6  ;;  %v835_v41 = vcombine.high %v834_v35, %v834_v35 }
0x13f7   :  { %v1355_v7 = vpop.eup %1354 }
0x13f8   :  { %v1041_v8 = vadd.f32 1.0, %v1355_v7 }
0x13fa   :  { %1356 = vrcp.f32 %v1041_v8 }
0x1404   :  { %v1357_v18 = vpop.eup %1356 }
0x1405   :  { %v1057_v32 = vsub.f32 1.0, %v1357_v18  ;;  %v1065_v37 = vmul.f32 %v1357_v18, %v1063_v33 }
0x145d   :  { %v1048_v19 = vpop.permute.xlu1 %1047 }
0x145e   :  { %v1050_v20 = vmul.f32 %v1357_v18, %v1048_v19 }
0x1460   :  { %1052 = vrot.lane.b32.xlu0 %v1050_v20, %s1363_s2 }
0x1464   :  { %236 = vrot.lane.b32.xlu0 %v235_v9, %s1364_s3 }
0x1468   :  { %477 = vrot.lane.b32.xlu0 %v476_v4, %s1366_s14 }
0x146c   :  { %600 = vrot.lane.b32.xlu0 %v599_v0, %s1363_s2 }
0x14d2   :  { %v1053_v26 = vpop.permute.xlu0 %1052 }
0x14d3   :  { %v1055_v27 = vadd.f32 %v1053_v26, %v1464_v22 }
0x14d5   :  { %1358 = vtanh.f32 %v1055_v27 }
0x14d6   :  { %v237_v52 = vpop.permute.xlu0 %236 }
0x14d7   :  { %240 = vst.msk [vmem:[%s1635_s5] sm:$0x3] %vm239_vm2, %v237_v52 }
0x14d8   :  { %359 = vst.msk [vmem:[%s1635_s5] sm:$0x3] %vm358_vm3, %v356_v40 }
0x14da   :  { %v478_v62 = vpop.permute.xlu0 %477 }
0x14db   :  { %481 = vst.msk [vmem:[%s1635_s5] sm:$0x3] %vm480_vm4, %v478_v62 }
0x14de   :  { %v601_v22 = vpop.permute.xlu0 %600 }
0x14df   :  { %v1359_v28 = vpop.eup %1358  ;;  %604 = vst.msk [vmem:[%s1635_s5] sm:$0x3] %vm603_vm5, %v601_v22 }
0x14e0   :  { %1059 = vrot.lane.b32.xlu1 %v1359_v28, %s1364_s3 }
0x14e4   :  { %716 = vrot.lane.b32.xlu1 %v715_v29, %s1364_s3 }
0x14e8   :  { %955 = vrot.lane.b32.xlu1 %v954_v31, %s1366_s14 }
0x1552   :  { %v1060_v36 = vpop.permute.xlu1 %1059 }
0x1553   :  { %v1062_v38 = vmul.f32 %v1060_v36, %v1057_v32 }
0x1555   :  { %v1066_v39 = vadd.f32 %v1065_v37, %v1062_v38 }
0x1556   :  { %v717_v42 = vpop.permute.xlu1 %716 }
0x1557   :  { %v1068_v43 = vcombine.high %v1066_v39, %v1066_v39  ;;  %719 = vst.msk [vmem:[%s1635_s5 + $0x2] sm:$0x3] %vm239_vm2, %v717_v42 }
0x1558   :  { %837 = vst.msk [vmem:[%s1635_s5 + $0x2] sm:$0x3] %vm358_vm3, %v835_v41 }
0x1559   :  { %v1075_v11 = vrot.slane %v1068_v43, %v234_v17 }
0x155a   :  { %v956_v44 = vpop.permute.xlu1 %955 }
0x155b   :  { %958 = vst.msk [vmem:[%s1635_s5 + $0x2] sm:$0x3] %vm480_vm4, %v956_v44  ;;  %v1076_v34 = vcombine.high %v1075_v11, %v1075_v11 }
0x155d   :  { %1077 = vrot.lane.b32.xlu1 %v1076_v34, %s1363_s2 }
0x15cf   :  { %v1078_v45 = vpop.permute.xlu1 %1077 }
0x15d0   :  { %1080 = vst.msk [vmem:[%s1635_s5 + $0x2] sm:$0x3] %vm603_vm5, %v1078_v45 }

</bundles_post_ra>
